<compile_context>
chip_gen: v6e
topology: v6e:2x2x1
jax: 0.10.0
libtpu: 0.0.40
codegen_flags: <defaults>
</compile_context>

<pallas_src>
import jax
import jax.numpy as jnp
from jax.experimental import pallas as pl
from jax.experimental.pallas import tpu as pltpu


def make_positional_encoding(max_tokens: int, embedding_dim: int) -> jnp.ndarray:
    """Deterministic parameter setup, mirroring the PyTorch __init__ exactly."""
    position = jnp.arange(0, max_tokens, dtype=jnp.float32)[:, None]            # [S, 1]
    div_term = 1.0 / (10000.0 ** (jnp.arange(0, embedding_dim, 2, dtype=jnp.float32)
                                  / embedding_dim))                             # [D/2]
    angles = position * div_term                                                # [S, D/2]
    pe = jnp.zeros((max_tokens, embedding_dim), dtype=jnp.float32)
    pe = pe.at[:, 0::2].set(jnp.sin(angles))
    pe = pe.at[:, 1::2].set(jnp.cos(angles))
    # torch: pe.unsqueeze(0).transpose(0, 1) -> [S, 1, D]; forward uses pe[:, 0] -> [S, D]
    return pe


def _pe_add_kernel(x_ref, pe_ref, o_ref):
    # x_ref / o_ref: (bb, ts, D)   pe_ref: (ts, D) -> broadcasts over the batch dim.
    o_ref[...] = (x_ref[...] + pe_ref[...]).astype(o_ref.dtype)


def positional_encoding_forward(x: jnp.ndarray, pe: jnp.ndarray) -> jnp.ndarray:
    """out[b, s, d] = x[b, s, d] + pe[s, d], computed in a Pallas kernel."""
    B, S, D = x.shape
    assert pe.shape == (S, D), f"pe shape {pe.shape} must equal (S, D)=({S},{D})"

    dt = x.dtype
    pe = pe.astype(dt)                      # match x's dtype (halves pe traffic for bf16)
    itemsize = jnp.dtype(dt).itemsize
    row_bytes = D * itemsize                # one (1, 1, D) row; full-D blocks (lane-dense
                                            # when D % 128 == 0, legal full-dim otherwise)

    target_block_bytes = 2 * 1024 * 1024    # ~2 MiB of x per grid step

    # ---- seq tiling -------------------------------------------------------
    pad_s = 0
    if S % 8 == 0:
        ts = max(8, min(S, (target_block_bytes // max(row_bytes, 1)) // 8 * 8))
        while S % ts != 0:                  # make the tile divide S exactly
            ts -= 8
    elif S * row_bytes <= 4 * target_block_bytes:
        ts = S                              # full (8-unaligned) seq dim -> one seq block
    else:
        # Rare: long, 8-unaligned sequence. Pad seq to a tile multiple (small copy
        # relative to the long sequence) so blocks stay (8,128)-conformant.
        ts = max(8, min(-(-S // 8) * 8,
                        (target_block_bytes // max(row_bytes, 1)) // 8 * 8))
        pad_s = (-(-S // ts) * ts) - S
    Sp = S + pad_s
    n_s = Sp // ts

    # ---- batch tiling -----------------------------------------------------
    if B * ts * row_bytes <= 2 * target_block_bytes:
        bb = B                              # fold the whole batch into one block
    else:
        bb = 1                              # one batch element per step (batch innermost)
    n_b = B // bb

    x_in, pe_in = x, pe
    if pad_s:
        x_in = jnp.pad(x, ((0, 0), (0, pad_s), (0, 0)))
        pe_in = jnp.pad(pe, ((0, pad_s), (0, 0)))

    # VMEM budget: double-buffered x, out and pe blocks plus headroom.
    x_blk = bb * ts * row_bytes
    pe_blk = ts * row_bytes
    vmem_limit = int(min(100 << 20, max(2 * (2 * x_blk + pe_blk) + (4 << 20), 16 << 20)))

    out = pl.pallas_call(
        _pe_add_kernel,
        out_shape=jax.ShapeDtypeStruct((B, Sp, D), dt),
        grid_spec=pltpu.PrefetchScalarGridSpec(
            num_scalar_prefetch=0,
            # batch innermost: pe's block index is constant across it, so the pe
            # tile is DMA'd only n_s times total, not B * n_s times.
            grid=(n_s, n_b),
            in_specs=[
                pl.BlockSpec((bb, ts, D), lambda s, b: (b, s, 0)),   # x tile
                pl.BlockSpec((ts, D), lambda s, b: (s, 0)),          # pe tile (b-invariant)
            ],
            out_specs=pl.BlockSpec((bb, ts, D), lambda s, b: (b, s, 0)),
        ),
        compiler_params=pltpu.CompilerParams(
            dimension_semantics=("parallel", "parallel"),
            vmem_limit_bytes=vmem_limit,
        ),
    )(x_in, pe_in)

    if pad_s:
        out = out[:, :S, :]
    return out


if __name__ == "__main__":
    # Small, deterministic config: max_tokens (seq) = 8, embedding_dim = 32, batch = 2.
    B, S, D = 2, 8, 32

    key = jax.random.PRNGKey(0)
    x = jax.random.normal(key, (B, S, D), dtype=jnp.float32)

    pe = make_positional_encoding(max_tokens=S, embedding_dim=D)

    # f32 path
    out = jax.block_until_ready(positional_encoding_forward(x, pe))
    ref = x + pe[None, :, :]
    assert out.shape == (B, S, D), out.shape
    assert out.dtype == x.dtype, out.dtype
    assert jnp.allclose(out, ref, atol=1e-6, rtol=1e-6), "f32 mismatch vs reference"

    # bf16 path (exercises the pe-dtype-match + explicit astype)
    x_bf16 = x.astype(jnp.bfloat16)
    out_bf16 = jax.block_until_ready(positional_encoding_forward(x_bf16, pe))
    ref_bf16 = x_bf16 + pe.astype(jnp.bfloat16)[None, :, :]
    assert out_bf16.dtype == jnp.bfloat16, out_bf16.dtype
    assert jnp.allclose(out_bf16.astype(jnp.float32),
                        ref_bf16.astype(jnp.float32),
                        atol=1e-2, rtol=1e-2), "bf16 mismatch vs reference"

    print("KERNEL_OK")
</pallas_src>

<mosaic_0001>
module attributes {stable_mosaic.version = 11 : i64} {
  func.func @_pe_add_kernel(%arg0: i32, %arg1: i32, %arg2: memref<2x8x32xf32, #tpu.memory_space<vmem>>, %arg3: memref<8x32xf32, #tpu.memory_space<vmem>>, %arg4: memref<2x8x32xf32, #tpu.memory_space<vmem>>) attributes {dimension_semantics = [#tpu.dimension_semantics<parallel>, #tpu.dimension_semantics<parallel>], iteration_bounds = array<i64: 1, 1>, scalar_prefetch = 0 : i64, scratch_operands = 0 : i64, tpu.core_type = #tpu.core_type<tc>, window_params = [{transform_indices = @transform_0, window_bounds = array<i64: 2, 8, 32>}, {transform_indices = @transform_1, window_bounds = array<i64: 8, 32>}, {transform_indices = @transform_2, window_bounds = array<i64: 2, 8, 32>}]} {
    %c0 = arith.constant 0 : index
    %c0_0 = arith.constant 0 : index
    %c0_1 = arith.constant 0 : index
    %0 = vector.load %arg2[%c0, %c0_0, %c0_1] : memref<2x8x32xf32, #tpu.memory_space<vmem>>, vector<2x8x32xf32>
    %c0_2 = arith.constant 0 : index
    %c0_3 = arith.constant 0 : index
    %1 = vector.load %arg3[%c0_2, %c0_3] : memref<8x32xf32, #tpu.memory_space<vmem>>, vector<8x32xf32>
    %2 = vector.shape_cast %1 : vector<8x32xf32> to vector<1x8x32xf32>
    %3 = vector.broadcast %2 : vector<1x8x32xf32> to vector<2x8x32xf32>
    %4 = arith.addf %0, %3 : vector<2x8x32xf32>
    %c0_4 = arith.constant 0 : index
    %c0_5 = arith.constant 0 : index
    %c0_6 = arith.constant 0 : index
    %5 = vector.load %arg4[%c0_4, %c0_5, %c0_6] : memref<2x8x32xf32, #tpu.memory_space<vmem>>, vector<2x8x32xf32>
    tpu.vector_store %arg4[%c0_4, %c0_5, %c0_6], %4 {strides = array<i32>} : memref<2x8x32xf32, #tpu.memory_space<vmem>>, vector<2x8x32xf32>,
    return
  }
  func.func @transform_0(%arg0: i32, %arg1: i32) -> (i32, i32, i32) {
    %c0_i32 = arith.constant 0 : i32
    %c0_i32_0 = arith.constant 0 : i32
    return %arg1, %arg0, %c0_i32 : i32, i32, i32
  }
  func.func @transform_1(%arg0: i32, %arg1: i32) -> (i32, i32) {
    %c0_i32 = arith.constant 0 : i32
    %c0_i32_0 = arith.constant 0 : i32
    return %arg0, %c0_i32 : i32, i32
  }
  func.func @transform_2(%arg0: i32, %arg1: i32) -> (i32, i32, i32) {
    %c0_i32 = arith.constant 0 : i32
    %c0_i32_0 = arith.constant 0 : i32
    return %arg1, %arg0, %c0_i32 : i32, i32, i32
  }
}

</mosaic_0001>

<bundles_post_ra>
// kernel: tpu_custom_call.1
= control target key start
LH: loop header
LB: loop body
LE: loop exit
PB: predicated region body
PF: predicated region fallthrough
CT: control target
= control target key end

     0   :  { %7 = vsyncpa [#allocation3], 0  ;;  %s170_s0 = inlined_call_operand.hbm [shape: f32[2,8,32], index: 0, kind: input, shape index: {}]   ;;  %s171_s1 = inlined_call_operand.hbm [shape: f32[8,32], index: 1, kind: input, shape index: {}]   ;;  %s172_s2 = inlined_call_operand.hbm [shape: f32[2,8,32], index: 2, kind: output, shape index: {}]  }
   0x1   :  { %8 = vsyncpa [#allocation6], 0 }
   0x2   :  { %9 = vsyncpa [#allocation4], 0  ;;  %s135_s9 = smov [#allocation2]  }
   0x3   :  { %s15_s10 = sshll.u32 %s135_s9, 4  ;;  %s16_s10 = int_to_ptr.vmem [resolvable:$true] %s15_s10 }
   0x4   :  { %s77_s11 = scalar_lea.vmem %s16_s10, 256  ;;  %p82_p1 = scmp.lt.s32.totalorder %s16_s10, %s16_s10 }
   0x5   :  { %p78_p0 = scmp.ne.s32.totalorder %s16_s10, %s77_s11  ;;  %p83_p2 = scmp.lt.s32.totalorder %s77_s11, %s77_s11 }
   0x7   :  { %p84_p3 = por %p83_p2, %p82_p1 }
   0x9   :  { %p85_p4 = pnand %p84_p3, %p78_p0 }
   0xb   :  { %88 = shalt.err (!%p85_p4)
}
   0xc   :  { %s136_s12 = smov 128   ;;  %s137_s13 = smov 8  }
   0xd   :  { %21 = dma.hbm_to_vmem [thread:$0]  %s170_s0, 256, %s16_s10, [#allocation3], %s136_s12, %s136_s12, %s137_s13  }
   0xe   :  { %s138_s16 = smov [#allocation5]  }
   0xf   :  { %s28_s17 = sshll.u32 %s138_s16, 4  ;;  %s29_s17 = int_to_ptr.vmem [resolvable:$true] %s28_s17 }
  0x10   :  { %s97_s18 = scalar_lea.vmem %s29_s17, 128  ;;  %p102_p6 = scmp.lt.s32.totalorder %s29_s17, %s29_s17 }
  0x11   :  { %p98_p5 = scmp.ne.s32.totalorder %s29_s17, %s97_s18  ;;  %p103_p7 = scmp.lt.s32.totalorder %s97_s18, %s97_s18 }
  0x13   :  { %p104_p8 = por %p103_p7, %p102_p6 }
  0x15   :  { %p105_p9 = pnand %p104_p8, %p98_p5 }
  0x17   :  { %108 = shalt.err (!%p105_p9)
}
  0x18   :  { %31 = dma.hbm_to_vmem [thread:$0]  %s171_s1, 128, %s29_s17, [#allocation6]  }
  0x19   :  { %129 = dma.done.wait [#allocation3], 256  }
  0x1a   :  { %130 = vsyncadd [#allocation3], 4294967040 }
  0x1b   :  { %131 = dma.done.wait [#allocation6], 128  }
  0x1c   :  { %132 = vsyncadd [#allocation6], 4294967168  ;;  %s139_s21 = smov [#allocation7]   ;;  %v38_v0 = vld [vmem:[#allocation2] sm:$0xff]  ;;  %v40_v1 = vld [vmem:[#allocation5] sm:$0xff]  ;;  %vm43_vm0 = vcmask 261120  }
  0x1d   :  { %s51_s0 = sshll.u32 %s139_s21, 4  ;;  %v39_v2 = vld [vmem:[#allocation2 + $0x8] sm:$0xff]  ;;  %v41_v3 = vadd.f32 %v40_v1, %v38_v0  ;;  %s52_s0 = int_to_ptr.vmem [resolvable:$true] %s51_s0 }
  0x1e   :  { %v42_v4 = vadd.f32 %v40_v1, %v39_v2  ;;  %s109_s22 = scalar_lea.vmem %s52_s0, 256  ;;  %p114_p11 = scmp.lt.s32.totalorder %s52_s0, %s52_s0 }
  0x1f   :  { %44 = vst.msk [vmem:[#allocation7] sm:$0xff] %vm43_vm0, %v41_v3  ;;  %p110_p10 = scmp.ne.s32.totalorder %s52_s0, %s109_s22  ;;  %p115_p12 = scmp.lt.s32.totalorder %s109_s22, %s109_s22 }
  0x20   :  { %45 = vst.msk [vmem:[#allocation7 + $0x8] sm:$0xff] %vm43_vm0, %v42_v4 }
  0x21   :  { %p116_p13 = por %p115_p12, %p114_p11 }
  0x23   :  { %p117_p0 = pnand %p116_p13, %p110_p10 }
  0x25   :  { %120 = shalt.err (!%p117_p0)
}
  0x26   :  { %57 = dma.vmem_to_hbm [thread:$0]  %s52_s0, 256, %s172_s2, [#allocation4], %s136_s12, %s136_s12, %s137_s13  }
  0x27   :  { %133 = dma.done.wait [#allocation4], 256  }
  0x28   :  { %134 = vsyncadd [#allocation4], 4294967040 }
  0x29   :  { %61 = vsyncpa [#allocation3], 1 }
  0x2a   :  { %62 = vsyncpa [#allocation6], 1 }
  0x2b   :  { %63 = vsyncpa [#allocation4], 1 }

</bundles_post_ra>
